<compile_context>
chip_gen: v7x
topology: tpu7x:2x2x1
jax: 0.10.0
libtpu: 0.0.40
codegen_flags: <defaults>
</compile_context>

<pallas_src>
import functools

import jax
import jax.numpy as jnp
from jax.experimental import pallas as pl
from jax.experimental.pallas import tpu as pltpu


def _cdiv(a, b):
    return -(-a // b)


def _round_up(x, m):
    return _cdiv(x, m) * m


def _conv_bn_relu_kernel(x_ref, w_ref, b_ref, o_ref, *, Wp, KH, KW, S_ext):
    """One grid step = one image x one Mt-wide slab of flattened output pixels.

    x_ref: (1, Cin_p, L_in)      bf16 zero-padded image, flattened over (Hp, Wp)
    w_ref: (KH*KW, Cout, Cin_p)  bf16 conv taps with BN scale folded in
    b_ref: (Cout, 1)             f32 folded BN bias
    o_ref: (1, Cout, Mt)         f32 lane-dense output slab (flat pixel index)
    """
    Cout, Mt = o_ref.shape[1], o_ref.shape[2]

    # Single 128-aligned dynamic load covering this slab plus the tap halo; the
    # KH*KW shifted windows below are then static lane slices (cheap XLU work).
    p0 = pl.multiple_of(pl.program_id(1) * Mt, 128)
    ext = x_ref[0, :, pl.ds(p0, Mt + S_ext)]              # (Cin_p, Mt + S_ext)

    acc = jnp.zeros((Cout, Mt), jnp.float32)
    for kh in range(KH):
        for kw in range(KW):
            s = kh * Wp + kw                              # flat shift of this tap
            win = ext[:, s:s + Mt]                        # (Cin_p, Mt), bf16
            acc = acc + jnp.dot(w_ref[kh * KW + kw], win,
                                preferred_element_type=jnp.float32)

    # Folded-BN bias + ReLU fused right before the unmasked lane-dense store.
    o_ref[0] = jnp.maximum(acc + b_ref[...], 0.0).astype(o_ref.dtype)


def basic_conv2d(x_nchw, weight_oihw, gamma, beta, running_mean, running_var,
                 *, stride=1, padding=1, dilation=1, eps=1e-3):
    """Forward pass of BasicConv2d (stride-1 conv, no bias, eval-mode BN, ReLU)."""
    assert stride == 1 and dilation == 1, "only stride=1, dilation=1 supported"

    N, Cin, H, W = x_nchw.shape
    Cout, Cin_w, KH, KW = weight_oihw.shape
    assert Cin == Cin_w, "channel mismatch"

    Hp, Wp = H + 2 * padding, W + 2 * padding
    Ho, Wo = Hp - KH + 1, Wp - KW + 1
    Cin_p = _round_up(Cin, 8)                  # sublane-align the channel dim

    # ---- tiling --------------------------------------------------------------
    # Flat output is computed on the padded-W grid (Ho x Wp); the KW-1 junk
    # columns per row and the tile padding are cropped in the wrapper.
    M = Ho * Wp
    min_m_steps = 1 if N >= 2 else 2           # keep both v7x TensorCores fed
    n_mt = max(min_m_steps, _cdiv(M, 1024))    # target ~1024-lane slabs
    Mt = _round_up(_cdiv(M, n_mt), 128)        # 128-multiple -> unmasked stores
    n_mt = _cdiv(M, Mt)
    M_pad = n_mt * Mt
    S_ext = _round_up((KH - 1) * Wp + (KW - 1), 128)   # tap halo, 128-aligned
    L_in = M_pad + S_ext                       # flat input length the kernel sees

    # ---- wrapper glue (plain JAX, one cheap pass over the *small* input) -----
    scale = gamma / jnp.sqrt(running_var + eps)
    w = weight_oihw.astype(jnp.float32) * scale[:, None, None, None]
    w = jnp.pad(w, ((0, 0), (0, Cin_p - Cin), (0, 0), (0, 0)))
    w_taps = jnp.transpose(w, (2, 3, 0, 1)).reshape(KH * KW, Cout, Cin_p)
    w_taps = w_taps.astype(jnp.bfloat16)       # bf16-native MXU (no int8 on v7x)
    bias = (beta - running_mean * scale).reshape(Cout, 1).astype(jnp.float32)

    x = jnp.pad(x_nchw.astype(jnp.float32),
                ((0, 0), (0, Cin_p - Cin),
                 (padding, padding), (padding, padding)))
    x_flat = x.reshape(N, Cin_p, Hp * Wp)
    x_flat = jnp.pad(x_flat, ((0, 0), (0, 0), (0, L_in - Hp * Wp)))
    x_flat = x_flat.astype(jnp.bfloat16)

    # ---- VMEM budget & cost hint ----------------------------------------------
    n_taps = KH * KW
    blk_x = Cin_p * L_in * 2
    blk_o = Cout * Mt * 4
    blk_w = n_taps * Cout * Cin_p * 2
    blk_b = Cout * 128 * 4
    live_tmp = Cin_p * (Mt + S_ext) * 2 + Cin_p * Mt * 2 + Cout * Mt * 4
    vmem_need = 2 * (blk_x + blk_o + blk_w + blk_b) + live_tmp
    vmem_limit = int(min(max(2 * vmem_need, 16 * 1024 * 1024), 48 * 1024 * 1024))

    cost = pl.CostEstimate(
        flops=2 * N * Ho * Wo * Cout * KH * KW * Cin,
        transcendentals=0,
        bytes_accessed=int(N * Cin_p * L_in * 2 + n_taps * Cout * Cin_p * 2
                           + Cout * 4 + N * Cout * M_pad * 4))

    kernel = functools.partial(_conv_bn_relu_kernel,
                               Wp=Wp, KH=KH, KW=KW, S_ext=S_ext)
    out_flat = pl.pallas_call(
        kernel,
        out_shape=jax.ShapeDtypeStruct((N, Cout, M_pad), jnp.float32),
        grid=(N, n_mt),
        in_specs=[
            pl.BlockSpec((1, Cin_p, L_in), lambda n, m: (n, 0, 0)),
            pl.BlockSpec((n_taps, Cout, Cin_p), lambda n, m: (0, 0, 0)),
            pl.BlockSpec((Cout, 1), lambda n, m: (0, 0)),
        ],
        out_specs=pl.BlockSpec((1, Cout, Mt), lambda n, m: (n, 0, m)),
        compiler_params=pltpu.CompilerParams(
            dimension_semantics=("parallel", "parallel"),
            vmem_limit_bytes=vmem_limit),
        cost_estimate=cost,
    )(x_flat, w_taps, bias)

    # Crop the padded-W flat grid back to (N, Cout, Ho, Wo); the KW-1 junk
    # columns per row and the flat-tile padding are dropped here.
    out = out_flat[:, :, :Ho * Wp].reshape(N, Cout, Ho, Wp)[:, :, :, :Wo]
    return out


def _reference(x_nchw, weight_oihw, gamma, beta, running_mean, running_var,
               *, padding=1, eps=1e-3):
    y = jax.lax.conv_general_dilated(
        x_nchw, weight_oihw, window_strides=(1, 1),
        padding=[(padding, padding), (padding, padding)],
        dimension_numbers=("NCHW", "OIHW", "NCHW"))
    scale = (gamma / jnp.sqrt(running_var + eps)).reshape(1, -1, 1, 1)
    bias = (beta - running_mean * gamma / jnp.sqrt(running_var + eps)).reshape(1, -1, 1, 1)
    return jnp.maximum(y * scale + bias, 0.0)


if __name__ == "__main__":
    # BasicConv2d(in_channels=4, out_channels=8, kernel_size=3, padding=1)
    N, Cin, H, W = 2, 4, 16, 16
    Cout, KH, KW = 8, 3, 3

    key = jax.random.PRNGKey(0)
    kx, kw_, kg, kb, km, kv = jax.random.split(key, 6)
    x = jax.random.normal(kx, (N, Cin, H, W), dtype=jnp.float32)
    weight = 0.1 * jax.random.normal(kw_, (Cout, Cin, KH, KW), dtype=jnp.float32)
    gamma = 1.0 + 0.1 * jax.random.normal(kg, (Cout,), dtype=jnp.float32)
    beta = 0.1 * jax.random.normal(kb, (Cout,), dtype=jnp.float32)
    running_mean = 0.1 * jax.random.normal(km, (Cout,), dtype=jnp.float32)
    running_var = jax.random.uniform(kv, (Cout,), minval=0.5, maxval=1.5,
                                     dtype=jnp.float32)

    out = basic_conv2d(x, weight, gamma, beta, running_mean, running_var,
                       padding=1, eps=1e-3)
    jax.block_until_ready(out)

    ref = _reference(x, weight, gamma, beta, running_mean, running_var,
                     padding=1, eps=1e-3)
    assert out.shape == (N, Cout, H, W)
    # bf16 inputs/weights with f32 accumulation -> relaxed tolerance vs the
    # pure-f32 reference (per the performance review).
    assert jnp.allclose(out, ref, atol=3e-2, rtol=3e-2), \
        float(jnp.max(jnp.abs(out - ref)))

    print("KERNEL_OK")
</pallas_src>

<mosaic_0001>
module attributes {stable_mosaic.version = 11 : i64} {
  func.func @_conv_bn_relu_kernel(%arg0: i32, %arg1: i32, %arg2: memref<1x8x512xbf16, #tpu.memory_space<vmem>>, %arg3: memref<9x8x8xbf16, #tpu.memory_space<vmem>>, %arg4: memref<8x1xf32, #tpu.memory_space<vmem>>, %arg5: memref<1x8x384xf32, #tpu.memory_space<vmem>>) attributes {dimension_semantics = [#tpu.dimension_semantics<parallel>, #tpu.dimension_semantics<parallel>], iteration_bounds = array<i64: 2, 1>, scalar_prefetch = 0 : i64, scratch_operands = 0 : i64, tpu.core_type = #tpu.core_type<tc>, window_params = [{transform_indices = @transform_0, window_bounds = array<i64: 1, 8, 512>}, {pipeline_mode = #tpu.pipeline_mode<synchronous>, transform_indices = @transform_1, window_bounds = array<i64: 9, 8, 8>}, {pipeline_mode = #tpu.pipeline_mode<synchronous>, transform_indices = @transform_2, window_bounds = array<i64: 8, 1>}, {transform_indices = @transform_3, window_bounds = array<i64: 1, 8, 384>}]} {
    %c384_i32 = arith.constant 384 : i32
    %0 = arith.muli %arg1, %c384_i32 : i32
    %1 = tpu.assume_multiple %0, 128 : i32
    %c0 = arith.constant 0 : index
    %c0_0 = arith.constant 0 : index
    %2 = arith.index_cast %1 : i32 to index
    %3 = vector.load %arg2[%c0, %c0_0, %2] : memref<1x8x512xbf16, #tpu.memory_space<vmem>>, vector<1x8x512xbf16>
    %4 = vector.shape_cast %3 : vector<1x8x512xbf16> to vector<8x512xbf16>
    %cst = arith.constant 0.000000e+00 : f32
    %5 = vector.broadcast %cst : f32 to vector<8x384xf32>
    %6 = vector.extract_strided_slice %4 {offsets = [0, 0], sizes = [8, 384], strides = [1, 1]} : vector<8x512xbf16> to vector<8x384xbf16>
    %c0_1 = arith.constant 0 : index
    %c0_2 = arith.constant 0 : index
    %c0_3 = arith.constant 0 : index
    %7 = vector.load %arg3[%c0_1, %c0_2, %c0_3] : memref<9x8x8xbf16, #tpu.memory_space<vmem>>, vector<1x8x8xbf16>
    %8 = vector.shape_cast %7 : vector<1x8x8xbf16> to vector<8x8xbf16>
    %cst_4 = arith.constant dense<0.000000e+00> : vector<8x384xf32>
    %9 = tpu.matmul %8, %6, %cst_4 {dimension_numbers = #tpu.dot_dimension_numbers<[1], [0], [0], [1], [0, 0, 1, 1], [], []>} : vector<8x8xbf16>, vector<8x384xbf16>, vector<8x384xf32> -> vector<8x384xf32>
    %10 = arith.addf %5, %9 : vector<8x384xf32>
    %11 = vector.extract_strided_slice %4 {offsets = [0, 1], sizes = [8, 384], strides = [1, 1]} : vector<8x512xbf16> to vector<8x384xbf16>
    %c1 = arith.constant 1 : index
    %c0_5 = arith.constant 0 : index
    %c0_6 = arith.constant 0 : index
    %12 = vector.load %arg3[%c1, %c0_5, %c0_6] : memref<9x8x8xbf16, #tpu.memory_space<vmem>>, vector<1x8x8xbf16>
    %13 = vector.shape_cast %12 : vector<1x8x8xbf16> to vector<8x8xbf16>
    %cst_7 = arith.constant dense<0.000000e+00> : vector<8x384xf32>
    %14 = tpu.matmul %13, %11, %cst_7 {dimension_numbers = #tpu.dot_dimension_numbers<[1], [0], [0], [1], [0, 0, 1, 1], [], []>} : vector<8x8xbf16>, vector<8x384xbf16>, vector<8x384xf32> -> vector<8x384xf32>
    %15 = arith.addf %10, %14 : vector<8x384xf32>
    %16 = vector.extract_strided_slice %4 {offsets = [0, 2], sizes = [8, 384], strides = [1, 1]} : vector<8x512xbf16> to vector<8x384xbf16>
    %c2 = arith.constant 2 : index
    %c0_8 = arith.constant 0 : index
    %c0_9 = arith.constant 0 : index
    %17 = vector.load %arg3[%c2, %c0_8, %c0_9] : memref<9x8x8xbf16, #tpu.memory_space<vmem>>, vector<1x8x8xbf16>
    %18 = vector.shape_cast %17 : vector<1x8x8xbf16> to vector<8x8xbf16>
    %cst_10 = arith.constant dense<0.000000e+00> : vector<8x384xf32>
    %19 = tpu.matmul %18, %16, %cst_10 {dimension_numbers = #tpu.dot_dimension_numbers<[1], [0], [0], [1], [0, 0, 1, 1], [], []>} : vector<8x8xbf16>, vector<8x384xbf16>, vector<8x384xf32> -> vector<8x384xf32>
    %20 = arith.addf %15, %19 : vector<8x384xf32>
    %21 = vector.extract_strided_slice %4 {offsets = [0, 18], sizes = [8, 384], strides = [1, 1]} : vector<8x512xbf16> to vector<8x384xbf16>
    %c3 = arith.constant 3 : index
    %c0_11 = arith.constant 0 : index
    %c0_12 = arith.constant 0 : index
    %22 = vector.load %arg3[%c3, %c0_11, %c0_12] : memref<9x8x8xbf16, #tpu.memory_space<vmem>>, vector<1x8x8xbf16>
    %23 = vector.shape_cast %22 : vector<1x8x8xbf16> to vector<8x8xbf16>
    %cst_13 = arith.constant dense<0.000000e+00> : vector<8x384xf32>
    %24 = tpu.matmul %23, %21, %cst_13 {dimension_numbers = #tpu.dot_dimension_numbers<[1], [0], [0], [1], [0, 0, 1, 1], [], []>} : vector<8x8xbf16>, vector<8x384xbf16>, vector<8x384xf32> -> vector<8x384xf32>
    %25 = arith.addf %20, %24 : vector<8x384xf32>
    %26 = vector.extract_strided_slice %4 {offsets = [0, 19], sizes = [8, 384], strides = [1, 1]} : vector<8x512xbf16> to vector<8x384xbf16>
    %c4 = arith.constant 4 : index
    %c0_14 = arith.constant 0 : index
    %c0_15 = arith.constant 0 : index
    %27 = vector.load %arg3[%c4, %c0_14, %c0_15] : memref<9x8x8xbf16, #tpu.memory_space<vmem>>, vector<1x8x8xbf16>
    %28 = vector.shape_cast %27 : vector<1x8x8xbf16> to vector<8x8xbf16>
    %cst_16 = arith.constant dense<0.000000e+00> : vector<8x384xf32>
    %29 = tpu.matmul %28, %26, %cst_16 {dimension_numbers = #tpu.dot_dimension_numbers<[1], [0], [0], [1], [0, 0, 1, 1], [], []>} : vector<8x8xbf16>, vector<8x384xbf16>, vector<8x384xf32> -> vector<8x384xf32>
    %30 = arith.addf %25, %29 : vector<8x384xf32>
    %31 = vector.extract_strided_slice %4 {offsets = [0, 20], sizes = [8, 384], strides = [1, 1]} : vector<8x512xbf16> to vector<8x384xbf16>
    %c5 = arith.constant 5 : index
    %c0_17 = arith.constant 0 : index
    %c0_18 = arith.constant 0 : index
    %32 = vector.load %arg3[%c5, %c0_17, %c0_18] : memref<9x8x8xbf16, #tpu.memory_space<vmem>>, vector<1x8x8xbf16>
    %33 = vector.shape_cast %32 : vector<1x8x8xbf16> to vector<8x8xbf16>
    %cst_19 = arith.constant dense<0.000000e+00> : vector<8x384xf32>
    %34 = tpu.matmul %33, %31, %cst_19 {dimension_numbers = #tpu.dot_dimension_numbers<[1], [0], [0], [1], [0, 0, 1, 1], [], []>} : vector<8x8xbf16>, vector<8x384xbf16>, vector<8x384xf32> -> vector<8x384xf32>
    %35 = arith.addf %30, %34 : vector<8x384xf32>
    %36 = vector.extract_strided_slice %4 {offsets = [0, 36], sizes = [8, 384], strides = [1, 1]} : vector<8x512xbf16> to vector<8x384xbf16>
    %c6 = arith.constant 6 : index
    %c0_20 = arith.constant 0 : index
    %c0_21 = arith.constant 0 : index
    %37 = vector.load %arg3[%c6, %c0_20, %c0_21] : memref<9x8x8xbf16, #tpu.memory_space<vmem>>, vector<1x8x8xbf16>
    %38 = vector.shape_cast %37 : vector<1x8x8xbf16> to vector<8x8xbf16>
    %cst_22 = arith.constant dense<0.000000e+00> : vector<8x384xf32>
    %39 = tpu.matmul %38, %36, %cst_22 {dimension_numbers = #tpu.dot_dimension_numbers<[1], [0], [0], [1], [0, 0, 1, 1], [], []>} : vector<8x8xbf16>, vector<8x384xbf16>, vector<8x384xf32> -> vector<8x384xf32>
    %40 = arith.addf %35, %39 : vector<8x384xf32>
    %41 = vector.extract_strided_slice %4 {offsets = [0, 37], sizes = [8, 384], strides = [1, 1]} : vector<8x512xbf16> to vector<8x384xbf16>
    %c7 = arith.constant 7 : index
    %c0_23 = arith.constant 0 : index
    %c0_24 = arith.constant 0 : index
    %42 = vector.load %arg3[%c7, %c0_23, %c0_24] : memref<9x8x8xbf16, #tpu.memory_space<vmem>>, vector<1x8x8xbf16>
    %43 = vector.shape_cast %42 : vector<1x8x8xbf16> to vector<8x8xbf16>
    %cst_25 = arith.constant dense<0.000000e+00> : vector<8x384xf32>
    %44 = tpu.matmul %43, %41, %cst_25 {dimension_numbers = #tpu.dot_dimension_numbers<[1], [0], [0], [1], [0, 0, 1, 1], [], []>} : vector<8x8xbf16>, vector<8x384xbf16>, vector<8x384xf32> -> vector<8x384xf32>
    %45 = arith.addf %40, %44 : vector<8x384xf32>
    %46 = vector.extract_strided_slice %4 {offsets = [0, 38], sizes = [8, 384], strides = [1, 1]} : vector<8x512xbf16> to vector<8x384xbf16>
    %c8 = arith.constant 8 : index
    %c0_26 = arith.constant 0 : index
    %c0_27 = arith.constant 0 : index
    %47 = vector.load %arg3[%c8, %c0_26, %c0_27] : memref<9x8x8xbf16, #tpu.memory_space<vmem>>, vector<1x8x8xbf16>
    %48 = vector.shape_cast %47 : vector<1x8x8xbf16> to vector<8x8xbf16>
    %cst_28 = arith.constant dense<0.000000e+00> : vector<8x384xf32>
    %49 = tpu.matmul %48, %46, %cst_28 {dimension_numbers = #tpu.dot_dimension_numbers<[1], [0], [0], [1], [0, 0, 1, 1], [], []>} : vector<8x8xbf16>, vector<8x384xbf16>, vector<8x384xf32> -> vector<8x384xf32>
    %50 = arith.addf %45, %49 : vector<8x384xf32>
    %c0_29 = arith.constant 0 : index
    %c0_30 = arith.constant 0 : index
    %51 = vector.load %arg4[%c0_29, %c0_30] : memref<8x1xf32, #tpu.memory_space<vmem>>, vector<8x1xf32>
    %52 = vector.broadcast %51 : vector<8x1xf32> to vector<8x384xf32>
    %53 = arith.addf %50, %52 : vector<8x384xf32>
    %cst_31 = arith.constant 0.000000e+00 : f32
    %54 = vector.broadcast %cst_31 : f32 to vector<8x384xf32>
    %55 = arith.maximumf %53, %54 : vector<8x384xf32>
    %c0_32 = arith.constant 0 : index
    %c0_33 = arith.constant 0 : index
    %c0_34 = arith.constant 0 : index
    %56 = vector.load %arg5[%c0_32, %c0_33, %c0_34] : memref<1x8x384xf32, #tpu.memory_space<vmem>>, vector<1x8x384xf32>
    %57 = vector.shape_cast %56 : vector<1x8x384xf32> to vector<8x384xf32>
    %58 = vector.shape_cast %55 : vector<8x384xf32> to vector<1x8x384xf32>
    tpu.vector_store %arg5[%c0_32, %c0_33, %c0_34], %58 {strides = array<i32>} : memref<1x8x384xf32, #tpu.memory_space<vmem>>, vector<1x8x384xf32>,
    return
  }
  func.func @transform_0(%arg0: i32, %arg1: i32) -> (i32, i32, i32) {
    %c0_i32 = arith.constant 0 : i32
    %c0_i32_0 = arith.constant 0 : i32
    %c0_i32_1 = arith.constant 0 : i32
    return %arg0, %c0_i32, %c0_i32_0 : i32, i32, i32
  }
  func.func @transform_1(%arg0: i32, %arg1: i32) -> (i32, i32, i32) {
    %c0_i32 = arith.constant 0 : i32
    %c0_i32_0 = arith.constant 0 : i32
    %c0_i32_1 = arith.constant 0 : i32
    %c0_i32_2 = arith.constant 0 : i32
    return %c0_i32, %c0_i32_0, %c0_i32_1 : i32, i32, i32
  }
  func.func @transform_2(%arg0: i32, %arg1: i32) -> (i32, i32) {
    %c0_i32 = arith.constant 0 : i32
    %c0_i32_0 = arith.constant 0 : i32
    %c0_i32_1 = arith.constant 0 : i32
    return %c0_i32, %c0_i32_0 : i32, i32
  }
  func.func @transform_3(%arg0: i32, %arg1: i32) -> (i32, i32, i32) {
    %c0_i32 = arith.constant 0 : i32
    %c0_i32_0 = arith.constant 0 : i32
    return %arg0, %c0_i32, %arg1 : i32, i32, i32
  }
}

</mosaic_0001>

<bundles_post_ra>
// kernel: tpu_custom_call.1
= control target key start
LH: loop header
LB: loop body
LE: loop exit
PB: predicated region body
PF: predicated region fallthrough
CT: control target
= control target key end

     0   :  { %8 = vsyncpa [#allocation3], 0  ;;  %s1836_s0 = inlined_call_operand.vmem [shape: bf16[2,8,512], index: 0, kind: input, shape index: {}]   ;;  %s1837_s1 = inlined_call_operand.vmem [shape: bf16[9,8,8], index: 1, kind: input, shape index: {}]   ;;  %s1838_s2 = inlined_call_operand.vmem [shape: f32[8,1], index: 2, kind: input, shape index: {}]   ;;  %s1839_s3 = inlined_call_operand.hbm [shape: f32[2,8,384], index: 3, kind: output, shape index: {}]  }
   0x1   :  { %10 = vsyncpa [#allocation3 + $0x1], 0  ;;  %s1586_s12 = smov 0   ;;  %s1588_s13 = smov 0  }
   0x2   :  { %s1590_s14 = smov 0   ;;  %s1592_s15 = smov 0  }
   0x3   :  { %s1594_s16 = smov 0   ;;  %s1596_s17 = smov 0  }
   0x4 LB: > { %s1279_s18 = sadd.s32 4294967295, %s1552_s17   ;;  %s1280_s19 = sadd.s32 4294967294, %s1552_s17   ;;  %s1552_s17 = sphi %s1596_s17, %s16_s17   ;;  %s1548_s16 = sphi %s1594_s16, %s1846_s16   ;;  %s1544_s15 = sphi %s1592_s15, %s1845_s15   ;;  %s1540_s14 = sphi %s1590_s14, %s1844_s14   ;;  %s1536_s13 = sphi %s1588_s13, %s1843_s13   ;;  %s1532_s12 = sphi %s1586_s12, %s1842_s12  }
   0x5   : > { %s28_s20 = sadd.s32 1, %s1548_s16  ;;  %s105_s21 = sadd.s32 1, %s1540_s14 }
   0x6   : > { %p30_p0 = scmp.ge.s32.totalorder %s28_s20, 2  ;;  %p115_p1 = scmp.ne.s32.totalorder %s1540_s14, %s1536_s13 }
   0x7   : > { %p116_p2 = scmp.eq.s32.totalorder %s1279_s18, 1  ;;  %p121_p3 = scmp.ne.s32.totalorder %s1536_s13, %s1532_s12 }
   0x8   : > { %s1848_s20 = smov (%p30_p0, %s28_s20), 0  ;;  %p122_p5 = scmp.eq.s32.totalorder %s1280_s19, 1 }
   0x9   : > { %p1626_p4 = por %p116_p2, %p115_p1  ;;  %s100_s23 = ssub.s32 %s1548_s16, %s1848_s20 }
   0xa   : > { %p1283_p6 = scmp.ge.s32.totalorder %s1552_s17, 1  ;;  %p103_p7 = scmp.eq.s32.totalorder %s100_s23, 0 }
   0xb   : > { %p1633_p8 = por %p122_p5, %p121_p3  ;;  %p154_p9 = scmp.lt.s32.totalorder %s1552_s17, 3 }
   0xc   : > { %s1639_s25 = scalar_select %p103_p7, %s1540_s14, %s105_s21  }
   0xd   : > { %p155_p10 = pnand %p1283_p6, %p154_p9 }
   0xe   : > { %p178_p11 = scmp.lt.s32.totalorder (!%p155_p10), %s1544_s15, 1  ;;  %v1554_v0 = vmov (!%p155_p10), 0.0   ;;  %v1555_v1 = vmov (!%p155_p10), 0   ;;  %vm1556_vm0 = vmmov (!%p155_p10), 0   ;;  %s1557_s4 = smov (!%p155_p10), 127   ;;  %v1175_v8 = vld [vmem:[%s1838_s2] sm:$0xff] (!%p155_p10) }
   0xf   : > { %158 = sbr.rel (%p155_p10) target bundleno = 450 (0x1c2), region = 32  ;;  %1347 = vmatprep.subr.bf16.mxu1 (!%p155_p10), %v1554_v0  ;;  %263 = vmatprep.mubr.bf16.mxu0 (!%p155_p10), %v1555_v1  ;;  %s1558_s5 = smov (!%p155_p10), 126   ;;  %vm213_vm1 = vcmask (!%p155_p10), 1039360   ;;  %vm221_vm2 = vcmask (!%p155_p10), 1043456   ;;  %v1286_v18 = vld [vmem:[%s1837_s1 + $0x4] sm:$0xf] (!%p155_p10) }
  0x10   : > { %1349 = vmatprep.mubr.msk.bf16.mxu1 (!%p155_p10), %vm1556_vm0, %v1554_v0  ;;  %1469 = vset.pattern.permute.xlu0 (!%p155_p10), %v1555_v1  ;;  %s1559_s6 = smov (!%p155_p10), 110   ;;  %s1560_s7 = smov (!%p155_p10), 109   ;;  %vm217_vm3 = vcmask (!%p155_p10), 64512   ;;  %vm415_vm4 = vcmask (!%p155_p10), 1031168   ;;  %v192_v28 = vld [vmem:[%s1837_s1] sm:$0xf] (!%p155_p10) }
  0x11   : > { %s1561_s8 = smov (!%p155_p10), 108   ;;  %s1562_s9 = smov (!%p155_p10), 92   ;;  %vm525_vm5 = vcmask (!%p155_p10), 900096   ;;  %v1297_v38 = vld [vmem:[%s1837_s1 + $0x8] sm:$0xf] (!%p155_p10)  ;;  %vm635_vm6 = vcmask (!%p155_p10), 891904  }
  0x12   : > { %s1563_s10 = smov (!%p155_p10), 91   ;;  %s1564_s11 = smov (!%p155_p10), 90   ;;  %v1301_v48 = vld [vmem:[%s1837_s1 + $0xc] sm:$0xf] (!%p155_p10)  ;;  %vm745_vm7 = vcmask (!%p155_p10), 883712   ;;  %vm855_vm8 = vcmask (!%p155_p10), 752640  }
  0x13   : > { %v1305_v58 = vld [vmem:[%s1837_s1 + $0x10] sm:$0xf] (!%p155_p10)  ;;  %vm965_vm9 = vcmask (!%p155_p10), 744448   ;;  %vm1075_vm10 = vcmask (!%p155_p10), 736256   ;;  %s175_s23 = sand.u32 (!%p155_p10), 1, %s1536_s13  }
  0x16   : > { %s179_s26 = scalar_select %p178_p11, %s1544_s15, 1 }
  0x18   : > { %s1328_s27 = sshll.u32 %s179_s26, 4  ;;  %s1401_s26 = smul.u32 24, %s175_s23 }
  0x19   : > { %s182_s30 = scalar_lea.vmem %s1836_s0, %s1328_s27  ;;  %s1402_s27 = smul.u32 384, %s1544_s15 }
  0x1a   : > { %v191_v2 = vld [vmem:[%s182_s30 + $0x8] sm:$0xff]  ;;  %v190_v3 = vld [vmem:[%s182_s30] sm:$0xff]  ;;  %s177_s28 = scalar_lea.vmem [#allocation2], %s1401_s26  ;;  %s1191_s15 = scalar_lea.sflag [#allocation3], %s175_s23 }
  0x1b   : > { %v1651_v4 = vcombine.low %v191_v2, %v191_v2  ;;  %v1653_v5 = vcombine.low %v190_v3, %v190_v3  ;;  %v1290_v6 = vcombine.high %v191_v2, %v191_v2  ;;  %v1288_v7 = vcombine.high %v190_v3, %v190_v3  ;;  %s1207_s29 = sshll.u32 %s177_s28, 4  ;;  %s1789_s29 = int_to_ptr.vmem [resolvable:$true] %s1207_s29 }
  0x1d   : > { %209 = vrot.lane.b32.xlu1 %v1651_v4, %s1557_s4  ;;  %205 = vrot.lane.b32.xlu0 %v1653_v5, %s1557_s4  ;;  %v316_v20 = vsel %vm221_vm2, %v1653_v5, 0  ;;  %v322_v21 = vsel %vm221_vm2, %v1651_v4, 0 }
  0x21   : > { %211 = vrot.lane.b32.xlu1 %v1290_v6, %s1557_s4  ;;  %207 = vrot.lane.b32.xlu0 %v1288_v7, %s1557_s4 }
  0x25   : > { %407 = vrot.lane.b32.xlu0 %v1653_v5, %s1558_s5  ;;  %409 = vrot.lane.b32.xlu1 %v1288_v7, %s1558_s5 }
  0x29   : > { %411 = vrot.lane.b32.xlu0 %v1651_v4, %s1558_s5  ;;  %413 = vrot.lane.b32.xlu1 %v1290_v6, %s1558_s5  ;;  %s1787_s5 = scalar_lea.hbm %s1839_s3, %s1402_s27 }
  0x2d   : > { %517 = vrot.lane.b32.xlu0 %v1653_v5, %s1559_s6  ;;  %519 = vrot.lane.b32.xlu1 %v1288_v7, %s1559_s6 }
  0x31   : > { %521 = vrot.lane.b32.xlu0 %v1651_v4, %s1559_s6  ;;  %523 = vrot.lane.b32.xlu1 %v1290_v6, %s1559_s6  ;;  %s1474_s6 = scalar_lea.vmem %s1789_s29, 384 }
  0x32   : > { %p1475_p12 = scmp.ne.s32.totalorder %s1789_s29, %s1474_s6 }
  0x34   : > { %p1476_p13 = pnand %p1475_p12, %p1626_p4 }
  0x35   : > { %627 = vrot.lane.b32.xlu0 %v1653_v5, %s1560_s7  ;;  %629 = vrot.lane.b32.xlu1 %v1288_v7, %s1560_s7 }
  0x36   : > { %p1477_p0 = pneg %p1476_p13 }
  0x39   : > { %631 = vrot.lane.b32.xlu0 %v1651_v4, %s1560_s7  ;;  %633 = vrot.lane.b32.xlu1 %v1290_v6, %s1560_s7  ;;  %s1565_s7 = smov [#allocation2]  }
  0x3d   : > { %737 = vrot.lane.b32.xlu0 %v1653_v5, %s1561_s8  ;;  %739 = vrot.lane.b32.xlu1 %v1288_v7, %s1561_s8 }
  0x41   : > { %741 = vrot.lane.b32.xlu0 %v1651_v4, %s1561_s8  ;;  %743 = vrot.lane.b32.xlu1 %v1290_v6, %s1561_s8  ;;  %s1478_s8 = sshll.u32 %s1565_s7, 4  ;;  %s1479_s8 = int_to_ptr.vmem [resolvable:$false] %s1478_s8 }
  0x42   : > { %p1481_p1 = scmp.lt.s32.totalorder %s1789_s29, %s1479_s8 }
  0x45   : > { %847 = vrot.lane.b32.xlu0 %v1653_v5, %s1562_s9  ;;  %849 = vrot.lane.b32.xlu1 %v1288_v7, %s1562_s9 }
  0x49   : > { %851 = vrot.lane.b32.xlu0 %v1651_v4, %s1562_s9  ;;  %853 = vrot.lane.b32.xlu1 %v1290_v6, %s1562_s9  ;;  %s1480_s9 = scalar_lea.vmem %s1479_s8, 768 }
  0x4a   : > { %p1482_p2 = scmp.lt.s32.totalorder %s1480_s9, %s1474_s6 }
  0x4c   : > { %p1483_p3 = por %p1482_p2, %p1481_p1 }
  0x4d   : > { %957 = vrot.lane.b32.xlu0 %v1653_v5, %s1563_s10  ;;  %959 = vrot.lane.b32.xlu1 %v1288_v7, %s1563_s10 }
  0x4e   : > { %p1484_p5 = pnand %p1483_p3, %p1477_p0 }
  0x51   : > { %961 = vrot.lane.b32.xlu0 %v1651_v4, %s1563_s10  ;;  %963 = vrot.lane.b32.xlu1 %v1290_v6, %s1563_s10 }
  0x55   : > { %1067 = vrot.lane.b32.xlu0 %v1653_v5, %s1564_s11  ;;  %1069 = vrot.lane.b32.xlu1 %v1288_v7, %s1564_s11 }
  0x59   : > { %1071 = vrot.lane.b32.xlu0 %v1651_v4, %s1564_s11  ;;  %1073 = vrot.lane.b32.xlu1 %v1290_v6, %s1564_s11  ;;  %v1309_v6 = vld [vmem:[%s1837_s1 + $0x14] sm:$0xf] }
  0x5d   : > { %1178 = vperm.xlu0 %1469, %v1175_v8  }
  0x8f   : > { %v210_v9 = vpop.permute.xlu1 %209  ;;  %v206_v10 = vpop.permute.xlu0 %205 }
  0x93   : > { %v212_v11 = vpop.permute.xlu1 %211  ;;  %v208_v12 = vpop.permute.xlu0 %207 }
  0x94   : > { %v215_v13 = vsel %vm213_vm1, %v208_v12, %v210_v9  ;;  %v214_v14 = vsel %vm213_vm1, %v206_v10, %v208_v12  ;;  %v216_v15 = vsel %vm213_vm1, %v210_v9, %v212_v11 }
  0x95   : > { %1291 = vmatprep.subr.msk.bf16.mxu0 %vm221_vm2, %v215_v13  ;;  %v223_v16 = vsel %vm221_vm2, %v214_v14, 0  ;;  %v229_v17 = vsel %vm221_vm2, %v216_v15, 0 }
  0x96   : > { %232 = vmatpush1.bf16.msra.mxu0 %v223_v16  ;;  %1348 = vmatpush3.bf16.msra.mxu1 %v229_v17  ;;  %v1313_v16 = vld [vmem:[%s1837_s1 + $0x18] sm:$0xf] }
  0x97   : > { %v408_v19 = vpop.permute.xlu0 %407  ;;  %1294 = vmatprep.subr.msk.bf16.mxu0 %vm221_vm2, %v1288_v7  ;;  %1353 = vmatprep.subr.bf16.mxu1 %v1554_v0  ;;  %v410_v22 = vpop.permute.xlu1 %409 }
  0x98   : > { %v416_v25 = vsel %vm415_vm4, %v408_v19, %v410_v22 }
  0x99   : > { %1292 = vmatmul.mubr.msk.bf16.vlgmr.msra.gmra.mrb[0].mxu0 %vm217_vm3, %v1286_v18  ;;  %1350 = vmatmul.mubr.msk.bf16.vlgmr.msra.gmra.mrb[0].mxu1 %vm217_vm3, %v1286_v18  ;;  %v423_v29 = vsel %vm221_vm2, %v416_v25, 0 }
  0x9a   : > { %325 = vmatpush1.bf16.msra.mxu0 %v316_v20  ;;  %1354 = vmatpush3.bf16.msra.mxu1 %v322_v21 }
  0x9b   : > { %v412_v23 = vpop.permute.xlu0 %411  ;;  %v414_v24 = vpop.permute.xlu1 %413  ;;  %356 = vmatprep.mubr.bf16.mxu0 %v1555_v1  ;;  %1355 = vmatprep.mubr.msk.bf16.mxu1 %vm1556_vm0, %v1554_v0 }
  0x9c   : > { %v417_v26 = vsel %vm415_vm4, %v410_v22, %v412_v23  ;;  %v418_v27 = vsel %vm415_vm4, %v412_v23, %v414_v24  ;;  %1359 = vmatprep.subr.bf16.mxu1 %v1554_v0 }
  0x9d   : > { %1298 = vmatprep.subr.msk.bf16.mxu0 %vm221_vm2, %v417_v26  ;;  %v429_v30 = vsel %vm221_vm2, %v418_v27, 0  ;;  %v1317_v26 = vld [vmem:[%s1837_s1 + $0x1c] sm:$0xf] }
  0x9f   : > { %v518_v31 = vpop.permute.xlu0 %517  ;;  %v520_v32 = vpop.permute.xlu1 %519 }
  0xa0   : > { %v526_v35 = vsel %vm525_vm5, %v518_v31, %v520_v32 }
  0xa1   : > { %1295 = vmatmul.mubr.msk.bf16.vlgmr.msra.gmra.mrb[4].mxu0 %vm217_vm3, %v192_v28  ;;  %1356 = vmatmul.mubr.msk.bf16.vlgmr.msra.gmra.mrb[4].mxu1 %vm217_vm3, %v192_v28  ;;  %v533_v39 = vsel %vm221_vm2, %v526_v35, 0 }
  0xa2   : > { %432 = vmatpush1.bf16.msra.mxu0 %v423_v29  ;;  %1360 = vmatpush3.bf16.msra.mxu1 %v429_v30  ;;  %v1321_v29 = vld [vmem:[%s1837_s1 + $0x20] sm:$0xf] }
  0xa3   : > { %v522_v33 = vpop.permute.xlu0 %521  ;;  %v524_v34 = vpop.permute.xlu1 %523  ;;  %1361 = vmatprep.mubr.msk.bf16.mxu1 %vm1556_vm0, %v1554_v0  ;;  %463 = vmatprep.mubr.bf16.mxu0 %v1555_v1 }
  0xa4   : > { %v527_v36 = vsel %vm525_vm5, %v520_v32, %v522_v33  ;;  %v528_v37 = vsel %vm525_vm5, %v522_v33, %v524_v34  ;;  %1365 = vmatprep.subr.bf16.mxu1 %v1554_v0 }
  0xa5   : > { %1302 = vmatprep.subr.msk.bf16.mxu0 %vm221_vm2, %v527_v36  ;;  %v539_v40 = vsel %vm221_vm2, %v528_v37, 0 }
  0xa7   : > { %v628_v41 = vpop.permute.xlu0 %627  ;;  %v630_v42 = vpop.permute.xlu1 %629 }
  0xa8   : > { %v636_v45 = vsel %vm635_vm6, %v628_v41, %v630_v42 }
  0xa9   : > { %1299 = vmatmul.mubr.msk.bf16.vlgmr.msra.gmra.mrb[8].mxu0 %vm217_vm3, %v1297_v38  ;;  %1362 = vmatmul.mubr.msk.bf16.vlgmr.msra.gmra.mrb[8].mxu1 %vm217_vm3, %v1297_v38  ;;  %v643_v49 = vsel %vm221_vm2, %v636_v45, 0 }
  0xaa   : > { %542 = vmatpush1.bf16.msra.mxu0 %v533_v39  ;;  %1366 = vmatpush3.bf16.msra.mxu1 %v539_v40 }
  0xab   : > { %v632_v43 = vpop.permute.xlu0 %631  ;;  %v634_v44 = vpop.permute.xlu1 %633  ;;  %1367 = vmatprep.mubr.msk.bf16.mxu1 %vm1556_vm0, %v1554_v0  ;;  %573 = vmatprep.mubr.bf16.mxu0 %v1555_v1 }
  0xac   : > { %v637_v46 = vsel %vm635_vm6, %v630_v42, %v632_v43  ;;  %v638_v47 = vsel %vm635_vm6, %v632_v43, %v634_v44  ;;  %1371 = vmatprep.subr.bf16.mxu1 %v1554_v0 }
  0xad   : > { %1306 = vmatprep.subr.msk.bf16.mxu0 %vm221_vm2, %v637_v46  ;;  %v649_v50 = vsel %vm221_vm2, %v638_v47, 0 }
  0xaf   : > { %v738_v51 = vpop.permute.xlu0 %737  ;;  %v740_v52 = vpop.permute.xlu1 %739 }
  0xb0   : > { %v746_v55 = vsel %vm745_vm7, %v738_v51, %v740_v52 }
  0xb1   : > { %1303 = vmatmul.mubr.msk.bf16.vlgmr.msra.gmra.mrb[12].mxu0 %vm217_vm3, %v1301_v48  ;;  %1368 = vmatmul.mubr.msk.bf16.vlgmr.msra.gmra.mrb[12].mxu1 %vm217_vm3, %v1301_v48  ;;  %v753_v59 = vsel %vm221_vm2, %v746_v55, 0 }
  0xb2   : > { %652 = vmatpush1.bf16.msra.mxu0 %v643_v49  ;;  %1372 = vmatpush3.bf16.msra.mxu1 %v649_v50 }
  0xb3   : > { %v742_v53 = vpop.permute.xlu0 %741  ;;  %v744_v54 = vpop.permute.xlu1 %743  ;;  %1373 = vmatprep.mubr.msk.bf16.mxu1 %vm1556_vm0, %v1554_v0  ;;  %683 = vmatprep.mubr.bf16.mxu0 %v1555_v1 }
  0xb4   : > { %v747_v56 = vsel %vm745_vm7, %v740_v52, %v742_v53  ;;  %v748_v57 = vsel %vm745_vm7, %v742_v53, %v744_v54  ;;  %1377 = vmatprep.subr.bf16.mxu1 %v1554_v0 }
  0xb5   : > { %1310 = vmatprep.subr.msk.bf16.mxu0 %vm221_vm2, %v747_v56  ;;  %v759_v60 = vsel %vm221_vm2, %v748_v57, 0 }
  0xb7   : > { %v848_v61 = vpop.permute.xlu0 %847  ;;  %v850_v62 = vpop.permute.xlu1 %849 }
  0xb8   : > { %v856_v3 = vsel %vm855_vm8, %v848_v61, %v850_v62 }
  0xb9   : > { %1307 = vmatmul.mubr.msk.bf16.vlgmr.msra.gmra.mrb[16].mxu0 %vm217_vm3, %v1305_v58  ;;  %1374 = vmatmul.mubr.msk.bf16.vlgmr.msra.gmra.mrb[16].mxu1 %vm217_vm3, %v1305_v58  ;;  %v863_v7 = vsel %vm221_vm2, %v856_v3, 0 }
  0xba   : > { %762 = vmatpush1.bf16.msra.mxu0 %v753_v59  ;;  %1378 = vmatpush3.bf16.msra.mxu1 %v759_v60 }
  0xbb   : > { %v852_v63 = vpop.permute.xlu0 %851  ;;  %v854_v2 = vpop.permute.xlu1 %853  ;;  %1379 = vmatprep.mubr.msk.bf16.mxu1 %vm1556_vm0, %v1554_v0  ;;  %793 = vmatprep.mubr.bf16.mxu0 %v1555_v1 }
  0xbc   : > { %v857_v4 = vsel %vm855_vm8, %v850_v62, %v852_v63  ;;  %v858_v5 = vsel %vm855_vm8, %v852_v63, %v854_v2  ;;  %1383 = vmatprep.subr.bf16.mxu1 %v1554_v0 }
  0xbd   : > { %1314 = vmatprep.subr.msk.bf16.mxu0 %vm221_vm2, %v857_v4  ;;  %v869_v8 = vsel %vm221_vm2, %v858_v5, 0 }
  0xbf   : > { %v958_v9 = vpop.permute.xlu0 %957  ;;  %v960_v10 = vpop.permute.xlu1 %959 }
  0xc0   : > { %v966_v13 = vsel %vm965_vm9, %v958_v9, %v960_v10 }
  0xc1   : > { %1311 = vmatmul.mubr.msk.bf16.vlgmr.msra.gmra.mrb[20].mxu0 %vm217_vm3, %v1309_v6  ;;  %1380 = vmatmul.mubr.msk.bf16.vlgmr.msra.gmra.mrb[20].mxu1 %vm217_vm3, %v1309_v6  ;;  %v973_v17 = vsel %vm221_vm2, %v966_v13, 0 }
  0xc2   : > { %872 = vmatpush1.bf16.msra.mxu0 %v863_v7  ;;  %1384 = vmatpush3.bf16.msra.mxu1 %v869_v8 }
  0xc3   : > { %v962_v11 = vpop.permute.xlu0 %961  ;;  %v964_v12 = vpop.permute.xlu1 %963  ;;  %1385 = vmatprep.mubr.msk.bf16.mxu1 %vm1556_vm0, %v1554_v0  ;;  %903 = vmatprep.mubr.bf16.mxu0 %v1555_v1 }
  0xc4   : > { %v967_v14 = vsel %vm965_vm9, %v960_v10, %v962_v11  ;;  %v968_v15 = vsel %vm965_vm9, %v962_v11, %v964_v12  ;;  %1389 = vmatprep.subr.bf16.mxu1 %v1554_v0 }
  0xc5   : > { %1318 = vmatprep.subr.msk.bf16.mxu0 %vm221_vm2, %v967_v14  ;;  %v979_v18 = vsel %vm221_vm2, %v968_v15, 0 }
  0xc7   : > { %v1068_v19 = vpop.permute.xlu0 %1067  ;;  %v1070_v20 = vpop.permute.xlu1 %1069 }
  0xc8   : > { %v1076_v23 = vsel %vm1075_vm10, %v1068_v19, %v1070_v20 }
  0xc9   : > { %1315 = vmatmul.mubr.msk.bf16.vlgmr.msra.gmra.mrb[24].mxu0 %vm217_vm3, %v1313_v16  ;;  %1386 = vmatmul.mubr.msk.bf16.vlgmr.msra.gmra.mrb[24].mxu1 %vm217_vm3, %v1313_v16  ;;  %v1083_v27 = vsel %vm221_vm2, %v1076_v23, 0 }
  0xca   : > { %982 = vmatpush1.bf16.msra.mxu0 %v973_v17  ;;  %1390 = vmatpush3.bf16.msra.mxu1 %v979_v18 }
  0xcb   : > { %v1072_v21 = vpop.permute.xlu0 %1071  ;;  %v1074_v22 = vpop.permute.xlu1 %1073  ;;  %1013 = vmatprep.mubr.bf16.mxu0 %v1555_v1  ;;  %1391 = vmatprep.mubr.msk.bf16.mxu1 %vm1556_vm0, %v1554_v0 }
  0xcc   : > { %v1077_v24 = vsel %vm1075_vm10, %v1070_v20, %v1072_v21  ;;  %v1078_v25 = vsel %vm1075_vm10, %v1072_v21, %v1074_v22  ;;  %1395 = vmatprep.subr.bf16.mxu1 %v1554_v0 }
  0xcd   : > { %1322 = vmatprep.subr.msk.bf16.mxu0 %vm221_vm2, %v1077_v24  ;;  %v1089_v28 = vsel %vm221_vm2, %v1078_v25, 0 }
  0xd1   : > { %1319 = vmatmul.mubr.msk.bf16.vlgmr.msra.gmra.mrb[28].mxu0 %vm217_vm3, %v1317_v26  ;;  %1392 = vmatmul.mubr.msk.bf16.vlgmr.msra.gmra.mrb[28].mxu1 %vm217_vm3, %v1317_v26 }
  0xd2   : > { %1092 = vmatpush1.bf16.msra.mxu0 %v1083_v27  ;;  %1396 = vmatpush3.bf16.msra.mxu1 %v1089_v28 }
  0xd3   : > { %1123 = vmatprep.mubr.bf16.mxu0 %v1555_v1  ;;  %1397 = vmatprep.mubr.msk.bf16.mxu1 %vm1556_vm0, %v1554_v0 }
  0xd9   : > { %1323 = vmatmul.mubr.msk.bf16.vlgmr.msra.gmra.mrb[32].mxu0 %vm217_vm3, %v1321_v29  ;;  %1398 = vmatmul.mubr.msk.bf16.vlgmr.msra.gmra.mrb[32].mxu1 %vm217_vm3, %v1321_v29 }
 0x16c   : > { %v265_v30 = vpop.f32.mrb[0].mxu0  ;;  %v306_v31 = vpop.f32.mrb[0].mxu1 }
 0x16d   : > { %v267_v32 = vpop.f32.mrb[1].mxu0  ;;  %v1351_v33 = vpop.f32.mrb[1].mxu1 }
 0x16e   : > { %v269_v34 = vpop.f32.mrb[2].mxu0  ;;  %v309_v35 = vpop.f32.mrb[2].mxu1 }
 0x16f   : > { %v270_v36 = vpop.f32.mrb[3].mxu0  ;;  %v1352_v37 = vpop.f32.mrb[3].mxu1 }
 0x174   : > { %v358_v1 = vpop.f32.mrb[4].mxu0  ;;  %v399_v38 = vpop.f32.mrb[4].mxu1 }
 0x175   : > { %v359_v39 = vadd.f32 %v358_v1, %v265_v30  ;;  %v400_v0 = vadd.f32 %v399_v38, %v306_v31  ;;  %v360_v40 = vpop.f32.mrb[5].mxu0  ;;  %v1357_v41 = vpop.f32.mrb[5].mxu1 }
 0x176   : > { %v361_v42 = vadd.f32 %v360_v40, %v267_v32  ;;  %v362_v43 = vpop.f32.mrb[6].mxu0  ;;  %v402_v44 = vpop.f32.mrb[6].mxu1 }
 0x177   : > { %v363_v45 = vpop.f32.mrb[7].mxu0  ;;  %v1358_v46 = vpop.f32.mrb[7].mxu1 }
 0x17c   : > { %v465_v47 = vpop.f32.mrb[8].mxu0  ;;  %v506_v48 = vpop.f32.mrb[8].mxu1 }
 0x17d   : > { %v512_v49 = vadd.f32 %v465_v47, %v359_v39  ;;  %v514_v50 = vadd.f32 %v506_v48, %v400_v0  ;;  %v467_v51 = vpop.f32.mrb[9].mxu0  ;;  %v1363_v52 = vpop.f32.mrb[9].mxu1 }
 0x17e   : > { %v513_v53 = vadd.f32 %v467_v51, %v361_v42  ;;  %v469_v54 = vpop.f32.mrb[10].mxu0  ;;  %v509_v55 = vpop.f32.mrb[10].mxu1 }
 0x17f   : > { %v470_v56 = vpop.f32.mrb[11].mxu0  ;;  %v1364_v57 = vpop.f32.mrb[11].mxu1 }
 0x184   : > { %v575_v58 = vpop.f32.mrb[12].mxu0  ;;  %v616_v59 = vpop.f32.mrb[12].mxu1 }
 0x185   : > { %v622_v60 = vadd.f32 %v575_v58, %v512_v49  ;;  %v624_v61 = vadd.f32 %v616_v59, %v514_v50  ;;  %v577_v62 = vpop.f32.mrb[13].mxu0  ;;  %v1369_v63 = vpop.f32.mrb[13].mxu1 }
 0x186   : > { %v623_v2 = vadd.f32 %v577_v62, %v513_v53  ;;  %v579_v3 = vpop.f32.mrb[14].mxu0  ;;  %v619_v4 = vpop.f32.mrb[14].mxu1 }
 0x187   : > { %v580_v5 = vpop.f32.mrb[15].mxu0  ;;  %v1370_v6 = vpop.f32.mrb[15].mxu1 }
 0x188   : > { %v1179_v49 = vpop.permute.xlu0 %1178 }
 0x18c   : > { %v685_v7 = vpop.f32.mrb[16].mxu0  ;;  %v726_v8 = vpop.f32.mrb[16].mxu1 }
 0x18d   : > { %v732_v9 = vadd.f32 %v685_v7, %v622_v60  ;;  %v734_v10 = vadd.f32 %v726_v8, %v624_v61  ;;  %v687_v11 = vpop.f32.mrb[17].mxu0  ;;  %v1375_v12 = vpop.f32.mrb[17].mxu1 }
 0x18e   : > { %v733_v13 = vadd.f32 %v687_v11, %v623_v2  ;;  %v689_v14 = vpop.f32.mrb[18].mxu0  ;;  %v729_v15 = vpop.f32.mrb[18].mxu1 }
 0x18f   : > { %v690_v16 = vpop.f32.mrb[19].mxu0  ;;  %v1376_v17 = vpop.f32.mrb[19].mxu1 }
 0x194   : > { %v795_v18 = vpop.f32.mrb[20].mxu0  ;;  %v836_v19 = vpop.f32.mrb[20].mxu1 }
 0x195   : > { %v842_v20 = vadd.f32 %v795_v18, %v732_v9  ;;  %v844_v21 = vadd.f32 %v836_v19, %v734_v10  ;;  %v797_v22 = vpop.f32.mrb[21].mxu0  ;;  %v1381_v23 = vpop.f32.mrb[21].mxu1 }
 0x196   : > { %v843_v24 = vadd.f32 %v797_v22, %v733_v13  ;;  %v799_v25 = vpop.f32.mrb[22].mxu0  ;;  %v839_v26 = vpop.f32.mrb[22].mxu1 }
 0x197   : > { %v800_v27 = vpop.f32.mrb[23].mxu0  ;;  %v1382_v28 = vpop.f32.mrb[23].mxu1 }
 0x19c   : > { %v905_v29 = vpop.f32.mrb[24].mxu0  ;;  %v946_v30 = vpop.f32.mrb[24].mxu1 }
 0x19d   : > { %v952_v31 = vadd.f32 %v905_v29, %v842_v20  ;;  %v954_v32 = vadd.f32 %v946_v30, %v844_v21  ;;  %v907_v33 = vpop.f32.mrb[25].mxu0  ;;  %v1387_v34 = vpop.f32.mrb[25].mxu1 }
 0x19e   : > { %v953_v35 = vadd.f32 %v907_v33, %v843_v24  ;;  %v909_v36 = vpop.f32.mrb[26].mxu0  ;;  %v949_v37 = vpop.f32.mrb[26].mxu1 }
 0x19f   : > { %v910_v1 = vpop.f32.mrb[27].mxu0  ;;  %v1388_v38 = vpop.f32.mrb[27].mxu1 }
 0x1a4   : > { %v1015_v39 = vpop.f32.mrb[28].mxu0  ;;  %v1056_v0 = vpop.f32.mrb[28].mxu1 }
 0x1a5   : > { %v1062_v40 = vadd.f32 %v1015_v39, %v952_v31  ;;  %v1064_v41 = vadd.f32 %v1056_v0, %v954_v32  ;;  %v1017_v42 = vpop.f32.mrb[29].mxu0  ;;  %v1393_v43 = vpop.f32.mrb[29].mxu1 }
 0x1a6   : > { %v1063_v44 = vadd.f32 %v1017_v42, %v953_v35  ;;  %v1019_v45 = vpop.f32.mrb[30].mxu0  ;;  %v1059_v46 = vpop.f32.mrb[30].mxu1 }
 0x1a7   : > { %v1020_v47 = vpop.f32.mrb[31].mxu0  ;;  %v1394_v48 = vpop.f32.mrb[31].mxu1 }
 0x1ac   : > { %v1125_v50 = vpop.f32.mrb[32].mxu0  ;;  %v1166_v51 = vpop.f32.mrb[32].mxu1 }
 0x1ad   : > { %v1172_v52 = vadd.f32 %v1125_v50, %v1062_v40  ;;  %v1174_v53 = vadd.f32 %v1166_v51, %v1064_v41  ;;  %v1127_v54 = vpop.f32.mrb[33].mxu0  ;;  %v1399_v55 = vpop.f32.mrb[33].mxu1 }
 0x1ae   : > { %v1173_v56 = vadd.f32 %v1127_v54, %v1063_v44  ;;  %v1169_v57 = vpop.f32.mrb[34].mxu1  ;;  %v1129_v58 = vpop.f32.mrb[34].mxu0 }
 0x1af   : > { %v1181_v59 = vadd.f32 %v1179_v49, %v1172_v52  ;;  %v1183_v60 = vadd.f32 %v1179_v49, %v1174_v53  ;;  %v1130_v61 = vpop.f32.mrb[35].mxu0  ;;  %v1400_v62 = vpop.f32.mrb[35].mxu1 }
 0x1b0   : > { %v1182_v63 = vadd.f32 %v1179_v49, %v1173_v56 }
 0x1b1   : > { %v1184_v2 = vmax.f32 %v1181_v59, 0.0  ;;  %v1186_v3 = vmax.f32 %v1183_v60, 0.0 }
 0x1b2   : > { %v1185_v4 = vmax.f32 %v1182_v63, 0.0 }
 0x1b3   : > { %1187 = vst [vmem:[%s177_s28] sm:$0xff] %v1184_v2  ;;  %1189 = vst [vmem:[%s177_s28 + $0x10] sm:$0xff] %v1186_v3 }
 0x1b4   : > { %1188 = vst [vmem:[%s177_s28 + $0x8] sm:$0xff] %v1185_v4 }
 0x1b5   : > { %1487 = shalt.err (!%p1484_p5)
}
 0x1b6   : > { %s1488_s10 = scalar_lea.hbm %s1787_s5, 384  ;;  %s1492_s19 = scalar_lea.hbm %s1839_s3, 768 }
 0x1b7   : > { %p1489_p6 = scmp.ne.s32.totalorder %s1787_s5, %s1488_s10  ;;  %p1493_p10 = scmp.lt.u32.totalorder %s1787_s5, %s1839_s3 }
 0x1b8   : > { %p1494_p11 = scmp.lt.u32.totalorder %s1492_s19, %s1488_s10  ;;  %p1496_p13 = scmp.lt.u32.totalorder %s1488_s10, %s1787_s5 }
 0x1b9   : > { %p1490_p7 = pnand %p1489_p6, %p1626_p4 }
 0x1ba   : > { %p1495_p12 = por %p1494_p11, %p1493_p10 }
 0x1bb   : > { %p1491_p9 = pneg %p1490_p7 }
 0x1bc   : > { %p1497_p0 = por %p1496_p13, %p1495_p12 }
 0x1be   : > { %p1498_p1 = pnand %p1497_p0, %p1491_p9 }
 0x1c0   : > { %1501 = shalt.err (!%p1498_p1)
}
 0x1c1   : > { %1403 = dma.vmem_to_hbm [thread:$0]  (%p1626_p4), %s1789_s29, 384, %s1787_s5, %s1191_s15  }
 0x1c2 PF: > { %p1409_p2 = scmp.ge.s32.totalorder %s1552_s17, 2  ;;  %s1219_s26 = sand.u32 1, %s1532_s12  }
 0x1c3   : > { %s1220_s27 = scalar_lea.sflag [#allocation3], %s1219_s26 }
 0x1c4   : > { %p1406_p3 = pnand %p1409_p2, %p1633_p8 }
 0x1c6   : > { %1527 = dma.done.wait (!%p1406_p3), %s1220_s27, 384  }
 0x1c7   : > { %1529 = vsyncadd (!%p1406_p3), %s1220_s27, 4294966912  ;;  %s16_s17 = sadd.s32 1, %s1552_s17   ;;  %s1842_s12 = smov %s1536_s13 }
 0x1c8   : > { %p13_p5 = scmp.ge.s32.totalorder %s16_s17, 4   ;;  %s1843_s13 = smov %s1540_s14 }
 0x1c9   : > { %s1844_s14 = smov %s1639_s25  ;;  %s1845_s15 = smov %s1548_s16 }
 0x1ca   : > { %s1846_s16 = smov %s1848_s20  ;;  %15 = sbr.rel (!%p13_p5) target bundleno = 4 (0x4), region = 76 }
 0x1d1   :  { %1225 = vsyncpa [#allocation3], 1 }
 0x1d2   :  { %1227 = vsyncpa [#allocation3 + $0x1], 1 }

</bundles_post_ra>
